<compile_context>
chip_gen: v7x
topology: tpu7x:2x2x1
jax: 0.10.0
libtpu: 0.0.40
codegen_flags: <defaults>
</compile_context>

<pallas_src>
import jax
import jax.numpy as jnp
from jax.experimental import pallas as pl
from jax.experimental.pallas import tpu as pltpu

_TINY = 1e-13  # allennlp tiny_value_of_dtype(torch.float)


def _masked_mean_kernel(inp_ref, mask_ref, out_ref, acc_ref, cnt_ref):
    """One (batch-tile, seq-tile) step of the masked mean over the seq axis.

    inp_ref : (TB, TS, D)  activations
    mask_ref: (TB, 1, TS)  padding mask (any nonzero == keep)
    out_ref : (TB, 1, D)   output block (written on the last seq step only)
    acc_ref : (TB, 1, D)   f32 running masked sum      (VMEM scratch)
    cnt_ref : (TB, 1, 1)   f32 running valid-token cnt (VMEM scratch)
    """
    k = pl.program_id(1)

    @pl.when(k == 0)
    def _init():
        acc_ref[...] = jnp.zeros_like(acc_ref)
        cnt_ref[...] = jnp.zeros_like(cnt_ref)

    x = inp_ref[...]                                  # (TB, TS, D)
    # masked_fill semantics: any nonzero mask value keeps the token. Match the
    # activation dtype so the contraction runs natively on the MXU.
    m = (mask_ref[...] != 0).astype(x.dtype)          # (TB, 1, TS)

    # Masked partial sum as a batched contraction on the MXU:
    #   (TB, 1, TS) @ (TB, TS, D) -> (TB, 1, D), accumulated in f32.
    acc_ref[...] += jnp.einsum(
        "bqs,bsd->bqd", m, x, preferred_element_type=jnp.float32)
    # Valid-token count, accumulated exactly in f32.
    cnt_ref[...] += jnp.sum(m.astype(jnp.float32), axis=2, keepdims=True)

    @pl.when(k == pl.num_programs(1) - 1)
    def _finalize():
        count = jnp.maximum(cnt_ref[...], _TINY)       # clamp(min=tiny)
        inv = pl.reciprocal(count, approx=True)        # EUP slot, not VPU divide
        out_ref[...] = (acc_ref[...] * inv).astype(out_ref.dtype)


def _pick_tile(total, target, mult):
    """Largest t <= target with t % mult == 0 and total % t == 0; else `total`.

    Falling back to `total` keeps the block equal to the full dim, which always
    satisfies the TPU (8, 128) block-shape rule.
    """
    if total <= target:
        return total
    t = (target // mult) * mult
    while t >= mult:
        if total % t == 0:
            return t
        t -= mult
    return total


def _choose_tiles(B, S, D, itemsize):
    # ~8 MiB per activation block: fat enough to reach the HBM roofline
    # (>=85% measured for >=512-row tiles) yet small enough that the
    # double-buffered inputs + output + scratch stay well under v7x's 64 MiB
    # VMEM (and trivially under v5e/v6e's 128 MiB).
    budget_elems = (8 * 1024 * 1024) // max(itemsize, 1)
    tb = _pick_tile(B, max(1, budget_elems // max(S * D, 1)), 1)
    # Sequence tile must be a multiple of 128 (it is the lane dim of the mask
    # block) unless it equals the full sequence length.
    ts = _pick_tile(S, max(128, budget_elems // max(tb * D, 1)), 128)
    return tb, ts


def input_layer_forward(hx, inp, mask, *, tile_b=None, tile_s=None):
    """Pallas implementation of InputLayer.forward (hx=None branch)."""
    if hx is not None:
        # TODO(synk): CombineLayer(dim, dim // 2) definition is missing from
        # the reference module; only the masked-mean path is implemented.
        raise NotImplementedError("CombineLayer branch not available")

    B, S, D = inp.shape
    # Keep the mask in its native (narrow) dtype; binarize/convert in-kernel.
    mask3 = mask.reshape(B, 1, S)

    TB, TS = _choose_tiles(B, S, D, jnp.dtype(inp.dtype).itemsize)
    if tile_b is not None:
        TB = tile_b
    if tile_s is not None:
        TS = tile_s
    assert B % TB == 0 and S % TS == 0, (B, S, TB, TS)
    grid = (B // TB, S // TS)

    # Note: for D not a multiple of 128 the final (TB, 1, D) store is a masked
    # vst, but the output is only 1/S of the HBM traffic here, so the kernel
    # stays input-bandwidth-bound.
    out = pl.pallas_call(
        _masked_mean_kernel,
        out_shape=jax.ShapeDtypeStruct((B, 1, D), inp.dtype),
        grid_spec=pltpu.PrefetchScalarGridSpec(
            num_scalar_prefetch=0,
            grid=grid,
            in_specs=[
                pl.BlockSpec((TB, TS, D), lambda i, k: (i, k, 0)),
                pl.BlockSpec((TB, 1, TS), lambda i, k: (i, 0, k)),
            ],
            out_specs=pl.BlockSpec((TB, 1, D), lambda i, k: (i, 0, 0)),
            scratch_shapes=[
                pltpu.VMEM((TB, 1, D), jnp.float32),   # running masked sum
                pltpu.VMEM((TB, 1, 1), jnp.float32),   # running token count
            ],
        ),
        compiler_params=pltpu.CompilerParams(
            # Batch tiles are independent (megacore-shardable on v7x); the
            # sequence axis is a reduction -> "arbitrary".
            dimension_semantics=("parallel", "arbitrary"),
            vmem_limit_bytes=48 * 1024 * 1024,
        ),
    )(inp, mask3)

    return out.reshape(B, D)


def _reference(inp, mask):
    mask_f = (mask != 0).astype(jnp.float32)
    masked_sum = jnp.sum(inp.astype(jnp.float32) * mask_f[:, :, None], axis=1)
    count = jnp.maximum(jnp.sum(mask_f, axis=1, keepdims=True), _TINY)
    return (masked_sum / count).astype(inp.dtype)


def _run_case(key, B, S, D, **tile_kw):
    k_inp, k_mask = jax.random.split(key)
    inp = jax.random.normal(k_inp, (B, S, D), dtype=jnp.float32)
    mask = jax.random.bernoulli(k_mask, p=0.7, shape=(B, S)).astype(jnp.int32)
    # Guarantee at least one valid position per row (typical padding mask).
    mask = mask.at[:, 0].set(1)

    out = input_layer_forward(None, inp, mask, **tile_kw)
    out = jax.block_until_ready(out)

    ref = _reference(inp, mask)
    assert out.shape == (B, D)
    # approx reciprocal (EUP) adds ~1e-4 relative error vs an exact divide.
    assert jnp.allclose(out, ref, atol=2e-3, rtol=2e-3)


if __name__ == "__main__":
    key = jax.random.PRNGKey(0)
    k0, k1 = jax.random.split(key)

    # InputLayer(dim=32, n_class=4); the hx=None path only needs inp and mask.
    _run_case(k0, B=2, S=8, D=32)

    # Exercise the multi-step sequence reduction (grid=(1, 2)) by forcing a
    # 128-token sequence tile on a 256-token input.
    _run_case(k1, B=2, S=256, D=32, tile_s=128)

    print("KERNEL_OK")
</pallas_src>

<mosaic_0001>
module attributes {stable_mosaic.version = 11 : i64} {
  func.func @_masked_mean_kernel(%arg0: i32, %arg1: i32, %arg2: memref<2x8x32xf32, #tpu.memory_space<vmem>>, %arg3: memref<2x1x8xi32, #tpu.memory_space<vmem>>, %arg4: memref<2x1x32xf32, #tpu.memory_space<vmem>>, %arg5: memref<2x1x32xf32, #tpu.memory_space<vmem>>, %arg6: memref<2x1x1xf32, #tpu.memory_space<vmem>>) attributes {dimension_semantics = [#tpu.dimension_semantics<parallel>, #tpu.dimension_semantics<arbitrary>], iteration_bounds = array<i64: 1, 1>, scalar_prefetch = 0 : i64, scratch_operands = 2 : i64, tpu.core_type = #tpu.core_type<tc>, window_params = [{transform_indices = @transform_0, window_bounds = array<i64: 2, 8, 32>}, {transform_indices = @transform_1, window_bounds = array<i64: 2, 1, 8>}, {transform_indices = @transform_2, window_bounds = array<i64: 2, 1, 32>}]} {
    %c0_i32 = arith.constant 0 : i32
    %0 = arith.cmpi eq, %arg1, %c0_i32 : i32
    %1 = arith.extui %0 : i1 to i32
    %c0_i32_0 = arith.constant 0 : i32
    %2 = arith.cmpi ne, %1, %c0_i32_0 : i32
    scf.if %2 {
      %cst_22 = arith.constant 0.000000e+00 : f32
      %21 = vector.broadcast %cst_22 : f32 to vector<2x1x32xf32>
      %c0_23 = arith.constant 0 : index
      %c0_24 = arith.constant 0 : index
      %c0_25 = arith.constant 0 : index
      %22 = vector.load %arg5[%c0_23, %c0_24, %c0_25] : memref<2x1x32xf32, #tpu.memory_space<vmem>>, vector<2x1x32xf32>
      tpu.vector_store %arg5[%c0_23, %c0_24, %c0_25], %21 {strides = array<i32>} : memref<2x1x32xf32, #tpu.memory_space<vmem>>, vector<2x1x32xf32>,
      %cst_26 = arith.constant 0.000000e+00 : f32
      %23 = vector.broadcast %cst_26 : f32 to vector<2x1x1xf32>
      %c0_27 = arith.constant 0 : index
      %c0_28 = arith.constant 0 : index
      %c0_29 = arith.constant 0 : index
      %24 = vector.load %arg6[%c0_27, %c0_28, %c0_29] : memref<2x1x1xf32, #tpu.memory_space<vmem>>, vector<2x1x1xf32>
      tpu.vector_store %arg6[%c0_27, %c0_28, %c0_29], %23 {strides = array<i32>} : memref<2x1x1xf32, #tpu.memory_space<vmem>>, vector<2x1x1xf32>,
    } else {
    }
    %c0 = arith.constant 0 : index
    %c0_1 = arith.constant 0 : index
    %c0_2 = arith.constant 0 : index
    %3 = vector.load %arg2[%c0, %c0_1, %c0_2] : memref<2x8x32xf32, #tpu.memory_space<vmem>>, vector<2x8x32xf32>
    %c0_3 = arith.constant 0 : index
    %c0_4 = arith.constant 0 : index
    %c0_5 = arith.constant 0 : index
    %4 = vector.load %arg3[%c0_3, %c0_4, %c0_5] : memref<2x1x8xi32, #tpu.memory_space<vmem>>, vector<2x1x8xi32>
    %c0_i32_6 = arith.constant 0 : i32
    %5 = vector.broadcast %c0_i32_6 : i32 to vector<2x1x8xi32>
    %6 = arith.cmpi ne, %4, %5 : vector<2x1x8xi32>
    %7 = arith.extui %6 : vector<2x1x8xi1> to vector<2x1x8xi32>
    %8 = arith.sitofp %7 : vector<2x1x8xi32> to vector<2x1x8xf32>
    %c0_7 = arith.constant 0 : index
    %c0_8 = arith.constant 0 : index
    %c0_9 = arith.constant 0 : index
    %9 = vector.load %arg5[%c0_7, %c0_8, %c0_9] : memref<2x1x32xf32, #tpu.memory_space<vmem>>, vector<2x1x32xf32>
    "tpu.trace_start"() <{level = 10 : i32, message = "bqs,bsd->bqd"}> : () -> ()
    %cst = arith.constant dense<0.000000e+00> : vector<2x1x32xf32>
    %10 = tpu.matmul %8, %3, %cst {dimension_numbers = #tpu.dot_dimension_numbers<[2], [1], [1], [2], [0, 0, 0, 1, 1, 2], [0], [0]>} : vector<2x1x8xf32>, vector<2x8x32xf32>, vector<2x1x32xf32> -> vector<2x1x32xf32>
    "tpu.trace_stop"() : () -> ()
    %11 = arith.addf %9, %10 : vector<2x1x32xf32>
    %c0_10 = arith.constant 0 : index
    %c0_11 = arith.constant 0 : index
    %c0_12 = arith.constant 0 : index
    %12 = vector.load %arg5[%c0_10, %c0_11, %c0_12] : memref<2x1x32xf32, #tpu.memory_space<vmem>>, vector<2x1x32xf32>
    tpu.vector_store %arg5[%c0_10, %c0_11, %c0_12], %11 {strides = array<i32>} : memref<2x1x32xf32, #tpu.memory_space<vmem>>, vector<2x1x32xf32>,
    %c0_13 = arith.constant 0 : index
    %c0_14 = arith.constant 0 : index
    %c0_15 = arith.constant 0 : index
    %13 = vector.load %arg6[%c0_13, %c0_14, %c0_15] : memref<2x1x1xf32, #tpu.memory_space<vmem>>, vector<2x1x1xf32>
    %cst_16 = arith.constant dense<0.000000e+00> : vector<2x1xf32>
    %14 = vector.multi_reduction <add>, %8, %cst_16 [2] : vector<2x1x8xf32> to vector<2x1xf32>
    %15 = vector.shape_cast %14 : vector<2x1xf32> to vector<2x1x1xf32>
    %16 = arith.addf %13, %15 : vector<2x1x1xf32>
    %c0_17 = arith.constant 0 : index
    %c0_18 = arith.constant 0 : index
    %c0_19 = arith.constant 0 : index
    %17 = vector.load %arg6[%c0_17, %c0_18, %c0_19] : memref<2x1x1xf32, #tpu.memory_space<vmem>>, vector<2x1x1xf32>
    tpu.vector_store %arg6[%c0_17, %c0_18, %c0_19], %16 {strides = array<i32>} : memref<2x1x1xf32, #tpu.memory_space<vmem>>, vector<2x1x1xf32>,
    %c0_i32_20 = arith.constant 0 : i32
    %18 = arith.cmpi eq, %arg1, %c0_i32_20 : i32
    %19 = arith.extui %18 : i1 to i32
    %c0_i32_21 = arith.constant 0 : i32
    %20 = arith.cmpi ne, %19, %c0_i32_21 : i32
    scf.if %20 {
      %c0_22 = arith.constant 0 : index
      %c0_23 = arith.constant 0 : index
      %c0_24 = arith.constant 0 : index
      %21 = vector.load %arg6[%c0_22, %c0_23, %c0_24] : memref<2x1x1xf32, #tpu.memory_space<vmem>>, vector<2x1x1xf32>
      %cst_25 = arith.constant 9.99999982E-14 : f32
      %22 = vector.broadcast %cst_25 : f32 to vector<2x1x1xf32>
      %23 = arith.maximumf %21, %22 : vector<2x1x1xf32>
      %24 = tpu.reciprocal %23 {approx = true} : vector<2x1x1xf32> -> vector<2x1x1xf32>
      %c0_26 = arith.constant 0 : index
      %c0_27 = arith.constant 0 : index
      %c0_28 = arith.constant 0 : index
      %25 = vector.load %arg5[%c0_26, %c0_27, %c0_28] : memref<2x1x32xf32, #tpu.memory_space<vmem>>, vector<2x1x32xf32>
      %26 = vector.broadcast %24 : vector<2x1x1xf32> to vector<2x1x32xf32>
      %27 = arith.mulf %25, %26 : vector<2x1x32xf32>
      %c0_29 = arith.constant 0 : index
      %c0_30 = arith.constant 0 : index
      %c0_31 = arith.constant 0 : index
      %28 = vector.load %arg4[%c0_29, %c0_30, %c0_31] : memref<2x1x32xf32, #tpu.memory_space<vmem>>, vector<2x1x32xf32>
      tpu.vector_store %arg4[%c0_29, %c0_30, %c0_31], %27 {strides = array<i32>} : memref<2x1x32xf32, #tpu.memory_space<vmem>>, vector<2x1x32xf32>,
    } else {
    }
    return
  }
  func.func @transform_0(%arg0: i32, %arg1: i32) -> (i32, i32, i32) {
    %c0_i32 = arith.constant 0 : i32
    %c0_i32_0 = arith.constant 0 : i32
    return %arg0, %arg1, %c0_i32 : i32, i32, i32
  }
  func.func @transform_1(%arg0: i32, %arg1: i32) -> (i32, i32, i32) {
    %c0_i32 = arith.constant 0 : i32
    %c0_i32_0 = arith.constant 0 : i32
    return %arg0, %c0_i32, %arg1 : i32, i32, i32
  }
  func.func @transform_2(%arg0: i32, %arg1: i32) -> (i32, i32, i32) {
    %c0_i32 = arith.constant 0 : i32
    %c0_i32_0 = arith.constant 0 : i32
    %c0_i32_1 = arith.constant 0 : i32
    return %arg0, %c0_i32, %c0_i32_0 : i32, i32, i32
  }
}

</mosaic_0001>

<bundles_post_ra>
// kernel: tpu_custom_call.1
= control target key start
LH: loop header
LB: loop body
LE: loop exit
PB: predicated region body
PF: predicated region fallthrough
CT: control target
= control target key end

     0   :  { %7 = vsyncpa [#allocation5], 0  ;;  %s411_s0 = inlined_call_operand.hbm [shape: f32[2,8,32], index: 0, kind: input, shape index: {}]   ;;  %s412_s1 = inlined_call_operand.vmem [shape: s32[2,1,8], index: 1, kind: input, shape index: {}]   ;;  %s413_s2 = inlined_call_operand.hbm [shape: f32[2,1,32], index: 2, kind: output, shape index: {}]  }
   0x1   :  { %8 = vsyncpa [#allocation6], 0  ;;  %s345_s9 = smov [#allocation4]   ;;  %s297_s13 = scalar_lea.hbm %s411_s0, 256 }
   0x2   :  { %s14_s10 = sshll.u32 %s345_s9, 4  ;;  %p298_p0 = scmp.ne.s32.totalorder %s411_s0, %s297_s13  ;;  %s15_s10 = int_to_ptr.vmem [resolvable:$true] %s14_s10 }
   0x3   :  { %p301_p1 = scmp.lt.u32.totalorder %s297_s13, %s411_s0 }
   0x5   :  { %p303_p2 = pnand %p301_p1, %p298_p0 }
   0x7   :  { %306 = shalt.err (!%p303_p2)
}
   0x8   :  { %s307_s18 = scalar_lea.vmem %s15_s10, 256  ;;  %p312_p4 = scmp.lt.s32.totalorder %s15_s10, %s15_s10 }
   0x9   :  { %p308_p3 = scmp.ne.s32.totalorder %s15_s10, %s307_s18  ;;  %p313_p5 = scmp.lt.s32.totalorder %s307_s18, %s307_s18 }
   0xb   :  { %p314_p6 = por %p313_p5, %p312_p4 }
   0xd   :  { %p315_p7 = pnand %p314_p6, %p308_p3 }
   0xf   :  { %318 = shalt.err (!%p315_p7)
}
  0x10   :  { %s346_s19 = smov 128   ;;  %s347_s20 = smov 8  }
  0x11   :  { %20 = dma.hbm_to_vmem [thread:$0]  %s411_s0, 256, %s15_s10, [#allocation5], %s346_s19, %s346_s19, %s347_s20  }
  0x12   :  { %341 = dma.done.wait [#allocation5], 256  }
  0x13   :  { %342 = vsyncadd [#allocation5], 4294967040  ;;  %v348_v0 = vmov 0.0   ;;  %vm349_vm0 = vmmov 0   ;;  %vm33_vm1 = vcmask 0   ;;  %vm202_vm2 = vcmask 57344  }
  0x14   :  { %272 = vmatprep.subr.mxu0 %v348_v0  ;;  %274 = vmatprep.mubr.msk.f32.mxu0 %vm349_vm0, %v348_v0  ;;  %34 = vst.msk [vmem:[#allocation3] sm:$0x1] %vm33_vm1, %v348_v0  ;;  %35 = vst.msk [vmem:[#allocation3 + $0x1] sm:$0x1] %vm33_vm1, %v348_v0  ;;  %v38_v1 = vld [vmem:[%s412_s1] sm:$0x1]  ;;  %v230_v30 = vlaneseq }
  0x15   :  { %277 = vmatprep.subr.mxu1 %v348_v0  ;;  %279 = vmatprep.mubr.msk.f32.mxu1 %vm349_vm0, %v348_v0  ;;  %v39_v2 = vld [vmem:[%s412_s1 + $0x1] sm:$0x1]  ;;  %v36_v3 = vld [vmem:[#allocation4] sm:$0xff]  ;;  %vm48_vm3 = vcmask 64512   ;;  %vm40_vm4 = vcmp.ne.s32.totalorder %v38_v1, 0  ;;  %v37_v4 = vld [vmem:[#allocation4 + $0x8] sm:$0xff] }
  0x16   :  { %vm41_vm5 = vcmp.ne.s32.totalorder %v39_v2, 0  ;;  %273 = vmatpush3.msra.mxu0 %v36_v3  ;;  %v264_v5 = vsel %vm40_vm4, 1.0, %v348_v0  ;;  %278 = vmatpush3.msra.mxu1 %v37_v4  ;;  %v350_v9 = vmov 0   ;;  %vm30_vm6 = vcmask 253952   ;;  %s351_s1 = smov [#allocation7]  }
  0x17   :  { %v265_v6 = vsel %vm41_vm5, 1.0, %v348_v0  ;;  %v203_v7 = vsel %vm202_vm2, %v264_v5, 0.0  ;;  %275 = vmatmul.mubr.msk.f32.vlgmr.msra.gmra.mrb[0].mxu0 %vm48_vm3, %v264_v5  ;;  %291 = vset.pattern.permute.xlu1 %v350_v9  ;;  %31 = vst.msk [vmem:[#allocation2] sm:$0x1] %vm30_vm6, %v348_v0  ;;  %32 = vst.msk [vmem:[#allocation2 + $0x1] sm:$0x1] %vm30_vm6, %v348_v0 }
  0x18   :  { %280 = vmatmul.mubr.msk.f32.vlgmr.msra.gmra.mrb[0].mxu1 %vm48_vm3, %v265_v6  ;;  %204 = vadd.xlane.f32.xlu0 %v203_v7  ;;  %v206_v8 = vsel %vm202_vm2, %v265_v6, 0.0  ;;  %v231_v31 = vshrl.u32 %v230_v30, 7  ;;  %s252_s26 = sshll.u32 %s351_s1, 4  ;;  %s253_s26 = int_to_ptr.vmem [resolvable:$true] %s252_s26 }
  0x19   :  { %292 = vset.pattern.permute.xlu0 %v350_v9  ;;  %s319_s27 = scalar_lea.vmem %s253_s26, 32  ;;  %p324_p9 = scmp.lt.s32.totalorder %s253_s26, %s253_s26 }
  0x1a   :  { %v232_v32 = vsub.s32 0, %v231_v31  ;;  %p320_p8 = scmp.ne.s32.totalorder %s253_s26, %s319_s27  ;;  %p325_p10 = scmp.lt.s32.totalorder %s319_s27, %s319_s27 }
  0x1b   :  { %v200_v10 = vld [vmem:[#allocation3] sm:$0x1]  ;;  %v201_v13 = vld [vmem:[#allocation3 + $0x1] sm:$0x1] }
  0x1c   :  { %207 = vadd.xlane.f32.xlu0 %v206_v8  ;;  %p326_p11 = por %p325_p10, %p324_p9 }
  0x1e   :  { %v46_v22 = vld [vmem:[#allocation2] sm:$0x1]  ;;  %v47_v23 = vld [vmem:[#allocation2 + $0x1] sm:$0x1]  ;;  %p327_p12 = pnand %p326_p11, %p320_p8 }
  0xa5   :  { %v205_v11 = vpop.xlane.xlu0 %204 }
  0xa6   :  { %v209_v12 = vadd.f32 %v205_v11, %v200_v10 }
  0xa8   :  { %212 = vst.msk [vmem:[#allocation3] sm:$0x1] %vm33_vm1, %v209_v12 }
  0xa9   :  { %v208_v14 = vpop.xlane.xlu0 %207 }
  0xaa   :  { %v210_v15 = vadd.f32 %v208_v14, %v201_v13 }
  0xac   :  { %213 = vst.msk [vmem:[#allocation3 + $0x1] sm:$0x1] %vm33_vm1, %v210_v15 }
  0xaf   :  { %v217_v16 = vld [vmem:[#allocation3] sm:$0x1] }
  0xb0   :  { %v219_v17 = vmax.f32 %v217_v16, 1e-13 }
  0xb2   :  { %293 = vrcp.f32 %v219_v17 }
  0xb3   :  { %v218_v18 = vld [vmem:[#allocation3 + $0x1] sm:$0x1] }
  0xb4   :  { %v220_v19 = vmax.f32 %v218_v18, 1e-13 }
  0xb6   :  { %295 = vrcp.f32 %v220_v19 }
  0xbc   :  { %v294_v20 = vpop.eup %293 }
  0xbd   :  { %227 = vperm.xlu1 %291, %v294_v20  }
  0xc0   :  { %v296_v21 = vpop.eup %295 }
  0xc1   :  { %236 = vperm.xlu1 %291, %v296_v21  }
  0xea   :  { %v118_v24 = vpop.f32.mrb[0].mxu0 }
  0xeb   :  { %v191_v25 = vpop.f32.mrb[0].mxu1  ;;  %v195_v26 = vadd.f32 %v118_v24, %v46_v22  ;;  %v276_v28 = vpop.f32.mrb[1].mxu0 }
  0xec   :  { %v196_v27 = vadd.f32 %v191_v25, %v47_v23  ;;  %v281_v29 = vpop.f32.mrb[1].mxu1 }
  0xed   :  { %198 = vst.msk [vmem:[#allocation2] sm:$0x1] %vm30_vm6, %v195_v26 }
  0xee   :  { %199 = vst.msk [vmem:[#allocation2 + $0x1] sm:$0x1] %vm30_vm6, %v196_v27 }
  0xf4   :  { %v223_v34 = vld [vmem:[#allocation2] sm:$0x1] }
  0xf5   :  { %v224_v38 = vld [vmem:[#allocation2 + $0x1] sm:$0x1] }
 0x13c   :  { %v228_v33 = vpop.permute.xlu1 %227 }
 0x13d   :  { %v233_v35 = vrot.slane %v228_v33, %v232_v32 }
 0x13f   :  { %v243_v36 = vmul.f32 %v233_v35, %v223_v34 }
 0x140   :  { %v237_v37 = vpop.permute.xlu1 %236 }
 0x141   :  { %245 = vst.msk [vmem:[#allocation7] sm:$0x1] %vm30_vm6, %v243_v36  ;;  %v242_v39 = vrot.slane %v237_v37, %v232_v32 }
 0x143   :  { %v244_v40 = vmul.f32 %v242_v39, %v224_v38 }
 0x145   :  { %246 = vst.msk [vmem:[#allocation7 + $0x1] sm:$0x1] %vm30_vm6, %v244_v40 }
 0x146   :  { %330 = shalt.err (!%p327_p12)
}
 0x147   :  { %s331_s30 = scalar_lea.hbm %s413_s2, 32 }
 0x148   :  { %p332_p13 = scmp.ne.s32.totalorder %s413_s2, %s331_s30  ;;  %p335_p0 = scmp.lt.u32.totalorder %s331_s30, %s413_s2 }
 0x14a   :  { %p337_p1 = pnand %p335_p0, %p332_p13 }
 0x14c   :  { %340 = shalt.err (!%p337_p1)
}
 0x14d   :  { %s352_s7 = smov 16   ;;  %s353_s8 = smov 1  }
 0x14e   :  { %258 = dma.vmem_to_hbm [thread:$0]  %s253_s26, 32, %s413_s2, [#allocation6], %s352_s7, %s352_s7, %s353_s8  }
 0x14f   :  { %343 = dma.done.wait [#allocation6], 32  }
 0x150   :  { %344 = vsyncadd [#allocation6], 4294967264 }
 0x151   :  { %262 = vsyncpa [#allocation5], 1 }
 0x152   :  { %263 = vsyncpa [#allocation6], 1 }

</bundles_post_ra>
